<compile_context>
chip_gen: v7x
topology: tpu7x:2x2x1
jax: 0.10.0
libtpu: 0.0.40
codegen_flags: <defaults>
</compile_context>

<pallas_src>
import functools

import jax
import jax.numpy as jnp
from jax.experimental import pallas as pl
from jax.experimental.pallas import tpu as pltpu


def _round_up(a, b):
    return (a + b - 1) // b * b


def corr2d_kernel(x_ref, w_ref, b_ref, o_ref, *, kh, kw, tile_ho):
    """x_ref: [H_pad, W_pad] VMEM (full image, resident),
    w_ref: [kh*kw] SMEM, b_ref: [1] SMEM,
    o_ref: [tile_ho, Wo_pad] VMEM (lane-dense output row strip)."""
    i = pl.program_id(0)
    _, wo = o_ref.shape  # wo == Wo_pad (multiple of 128)

    # Halo'd input row strip for this output strip: [tile_ho + kh - 1, W_pad].
    row0 = pl.multiple_of(i * tile_ho, 8)
    xs = x_ref[pl.ds(row0, tile_ho + kh - 1), :]

    # Bias folded into the accumulator init.
    acc = jnp.full((tile_ho, wo), b_ref[0], jnp.float32)

    # Hoist the lane-axis (last-dim) shift out of the tap loop: kw XLU lane
    # shifts total; the inner di loop is only cheap sublane shifts + VPU MACs.
    for dj in range(kw):
        xc = xs[:, dj:dj + wo]                     # [tile_ho + kh - 1, wo]
        for di in range(kh):
            acc = acc + w_ref[di * kw + dj] * xc[di:di + tile_ho, :]

    o_ref[...] = acc  # unmasked lane-dense store


def conv2d_forward(x, weight, bias):
    """Pallas equivalent of Conv2D.forward: corr2d(x, weight) + bias."""
    kh, kw = weight.shape
    h, w = x.shape
    ho, wo = h - kh + 1, w - kw + 1

    # Output row-strip tile (sublane dim): multiple of 8; acc strip kept small.
    tile_ho = min(32, _round_up(ho, 8))
    ho_pad = _round_up(ho, tile_ho)
    wo_pad = _round_up(wo, 128)                    # lane-dense output width

    # Pad x (zeros) so the padded output region is fully computable and the
    # resident x slab is (8,128)-aligned.
    h_pad = _round_up(ho_pad + kh - 1, 8)
    w_pad = _round_up(wo_pad + kw - 1, 128)
    x_pad = jnp.pad(x.astype(jnp.float32),
                    ((0, h_pad - h), (0, w_pad - w)))

    w_flat = weight.astype(jnp.float32).reshape(-1)    # [kh*kw] -> SMEM
    b_flat = bias.astype(jnp.float32).reshape(-1)      # [1]     -> SMEM

    num_row_tiles = ho_pad // tile_ho

    # VMEM budget: resident x (+ possible double buffer) + double-buffered
    # output tiles + slack.  Cap well under v7x's 64 MiB physical VMEM.
    x_bytes = h_pad * w_pad * 4
    o_tile_bytes = tile_ho * wo_pad * 4
    vmem_need = 2 * x_bytes + 4 * o_tile_bytes + (1 << 20)
    vmem_limit = min(max(vmem_need, 16 * 1024 * 1024), 48 * 1024 * 1024)

    kernel = functools.partial(corr2d_kernel, kh=kh, kw=kw, tile_ho=tile_ho)

    out_pad = pl.pallas_call(
        kernel,
        out_shape=jax.ShapeDtypeStruct((ho_pad, wo_pad), jnp.float32),
        grid=(num_row_tiles,),
        in_specs=[
            # Full image resident in VMEM (constant block index -> fetched once).
            pl.BlockSpec((h_pad, w_pad), lambda i: (0, 0),
                         memory_space=pltpu.MemorySpace.VMEM),
            pl.BlockSpec(memory_space=pltpu.MemorySpace.SMEM),   # weight (1D scalars)
            pl.BlockSpec(memory_space=pltpu.MemorySpace.SMEM),   # bias (scalar)
        ],
        out_specs=pl.BlockSpec((tile_ho, wo_pad), lambda i: (i, 0),
                               memory_space=pltpu.MemorySpace.VMEM),
        compiler_params=pltpu.CompilerParams(
            dimension_semantics=("parallel",),     # shards row tiles across TCs on v7x
            vmem_limit_bytes=vmem_limit,
        ),
    )(x_pad, w_flat, b_flat)

    return out_pad[:ho, :wo]


def conv2d_reference(x, weight, bias):
    """Pure-JAX reference (same math as the PyTorch corr2d loops)."""
    kh, kw = weight.shape
    h, w = x.shape
    ho, wo = h - kh + 1, w - kw + 1
    acc = jnp.zeros((ho, wo), jnp.float32)
    for di in range(kh):
        for dj in range(kw):
            acc = acc + weight[di, dj] * x[di:di + ho, dj:dj + wo]
    return acc + bias[0]


if __name__ == "__main__":
    key = jax.random.PRNGKey(0)
    kx, kw_key, kb_key = jax.random.split(key, 3)

    # Small shapes consistent with the module: single 2D image, 3x3 kernel.
    H, W = 16, 16
    kernel_size = (3, 3)

    x = jax.random.normal(kx, (H, W), dtype=jnp.float32)
    # Module's __init__: weight = randn(kernel_size), bias = randn(1).
    weight = jax.random.normal(kw_key, kernel_size, dtype=jnp.float32)
    bias = jax.random.normal(kb_key, (1,), dtype=jnp.float32)

    out = conv2d_forward(x, weight, bias)
    out = jax.block_until_ready(out)

    ref = conv2d_reference(x, weight, bias)
    assert out.shape == (H - kernel_size[0] + 1, W - kernel_size[1] + 1)
    assert out.dtype == jnp.float32
    assert jnp.allclose(out, ref, atol=1e-5, rtol=1e-5)

    print("KERNEL_OK")
</pallas_src>

<mosaic_0001>
module attributes {stable_mosaic.version = 11 : i64} {
  func.func @corr2d_kernel(%arg0: i32, %arg1: memref<24x256xf32, #tpu.memory_space<vmem>>, %arg2: memref<9xf32, #tpu.memory_space<smem>>, %arg3: memref<1xf32, #tpu.memory_space<smem>>, %arg4: memref<16x128xf32, #tpu.memory_space<vmem>>) attributes {dimension_semantics = [#tpu.dimension_semantics<parallel>], iteration_bounds = array<i64: 1>, scalar_prefetch = 0 : i64, scratch_operands = 0 : i64, tpu.core_type = #tpu.core_type<tc>, window_params = [{pipeline_mode = #tpu.pipeline_mode<synchronous>, transform_indices = @transform_0, window_bounds = array<i64: 24, 256>}, {transform_indices = @transform_1, window_bounds = array<i64: 9>}, {transform_indices = @transform_2, window_bounds = array<i64: 1>}, {transform_indices = @transform_3, window_bounds = array<i64: 16, 128>}]} {
    %c16_i32 = arith.constant 16 : i32
    %0 = arith.muli %arg0, %c16_i32 : i32
    %1 = tpu.assume_multiple %0, 8 : i32
    %2 = arith.index_cast %1 : i32 to index
    %c0 = arith.constant 0 : index
    %3 = vector.load %arg1[%2, %c0] : memref<24x256xf32, #tpu.memory_space<vmem>>, vector<18x256xf32>
    %c0_0 = arith.constant 0 : index
    %4 = memref.load %arg3[%c0_0] : memref<1xf32, #tpu.memory_space<smem>>
    %5 = vector.broadcast %4 : f32 to vector<16x128xf32>
    %6 = vector.extract_strided_slice %3 {offsets = [0, 0], sizes = [18, 128], strides = [1, 1]} : vector<18x256xf32> to vector<18x128xf32>
    %c0_1 = arith.constant 0 : index
    %7 = memref.load %arg2[%c0_1] : memref<9xf32, #tpu.memory_space<smem>>
    %8 = vector.extract_strided_slice %6 {offsets = [0, 0], sizes = [16, 128], strides = [1, 1]} : vector<18x128xf32> to vector<16x128xf32>
    %9 = vector.broadcast %7 : f32 to vector<16x128xf32>
    %10 = arith.mulf %9, %8 : vector<16x128xf32>
    %11 = arith.addf %5, %10 : vector<16x128xf32>
    %c3 = arith.constant 3 : index
    %12 = memref.load %arg2[%c3] : memref<9xf32, #tpu.memory_space<smem>>
    %13 = vector.extract_strided_slice %6 {offsets = [1, 0], sizes = [16, 128], strides = [1, 1]} : vector<18x128xf32> to vector<16x128xf32>
    %14 = vector.broadcast %12 : f32 to vector<16x128xf32>
    %15 = arith.mulf %14, %13 : vector<16x128xf32>
    %16 = arith.addf %11, %15 : vector<16x128xf32>
    %c6 = arith.constant 6 : index
    %17 = memref.load %arg2[%c6] : memref<9xf32, #tpu.memory_space<smem>>
    %18 = vector.extract_strided_slice %6 {offsets = [2, 0], sizes = [16, 128], strides = [1, 1]} : vector<18x128xf32> to vector<16x128xf32>
    %19 = vector.broadcast %17 : f32 to vector<16x128xf32>
    %20 = arith.mulf %19, %18 : vector<16x128xf32>
    %21 = arith.addf %16, %20 : vector<16x128xf32>
    %22 = vector.extract_strided_slice %3 {offsets = [0, 1], sizes = [18, 128], strides = [1, 1]} : vector<18x256xf32> to vector<18x128xf32>
    %c1 = arith.constant 1 : index
    %23 = memref.load %arg2[%c1] : memref<9xf32, #tpu.memory_space<smem>>
    %24 = vector.extract_strided_slice %22 {offsets = [0, 0], sizes = [16, 128], strides = [1, 1]} : vector<18x128xf32> to vector<16x128xf32>
    %25 = vector.broadcast %23 : f32 to vector<16x128xf32>
    %26 = arith.mulf %25, %24 : vector<16x128xf32>
    %27 = arith.addf %21, %26 : vector<16x128xf32>
    %c4 = arith.constant 4 : index
    %28 = memref.load %arg2[%c4] : memref<9xf32, #tpu.memory_space<smem>>
    %29 = vector.extract_strided_slice %22 {offsets = [1, 0], sizes = [16, 128], strides = [1, 1]} : vector<18x128xf32> to vector<16x128xf32>
    %30 = vector.broadcast %28 : f32 to vector<16x128xf32>
    %31 = arith.mulf %30, %29 : vector<16x128xf32>
    %32 = arith.addf %27, %31 : vector<16x128xf32>
    %c7 = arith.constant 7 : index
    %33 = memref.load %arg2[%c7] : memref<9xf32, #tpu.memory_space<smem>>
    %34 = vector.extract_strided_slice %22 {offsets = [2, 0], sizes = [16, 128], strides = [1, 1]} : vector<18x128xf32> to vector<16x128xf32>
    %35 = vector.broadcast %33 : f32 to vector<16x128xf32>
    %36 = arith.mulf %35, %34 : vector<16x128xf32>
    %37 = arith.addf %32, %36 : vector<16x128xf32>
    %38 = vector.extract_strided_slice %3 {offsets = [0, 2], sizes = [18, 128], strides = [1, 1]} : vector<18x256xf32> to vector<18x128xf32>
    %c2 = arith.constant 2 : index
    %39 = memref.load %arg2[%c2] : memref<9xf32, #tpu.memory_space<smem>>
    %40 = vector.extract_strided_slice %38 {offsets = [0, 0], sizes = [16, 128], strides = [1, 1]} : vector<18x128xf32> to vector<16x128xf32>
    %41 = vector.broadcast %39 : f32 to vector<16x128xf32>
    %42 = arith.mulf %41, %40 : vector<16x128xf32>
    %43 = arith.addf %37, %42 : vector<16x128xf32>
    %c5 = arith.constant 5 : index
    %44 = memref.load %arg2[%c5] : memref<9xf32, #tpu.memory_space<smem>>
    %45 = vector.extract_strided_slice %38 {offsets = [1, 0], sizes = [16, 128], strides = [1, 1]} : vector<18x128xf32> to vector<16x128xf32>
    %46 = vector.broadcast %44 : f32 to vector<16x128xf32>
    %47 = arith.mulf %46, %45 : vector<16x128xf32>
    %48 = arith.addf %43, %47 : vector<16x128xf32>
    %c8 = arith.constant 8 : index
    %49 = memref.load %arg2[%c8] : memref<9xf32, #tpu.memory_space<smem>>
    %50 = vector.extract_strided_slice %38 {offsets = [2, 0], sizes = [16, 128], strides = [1, 1]} : vector<18x128xf32> to vector<16x128xf32>
    %51 = vector.broadcast %49 : f32 to vector<16x128xf32>
    %52 = arith.mulf %51, %50 : vector<16x128xf32>
    %53 = arith.addf %48, %52 : vector<16x128xf32>
    %c0_2 = arith.constant 0 : index
    %c0_3 = arith.constant 0 : index
    %54 = vector.load %arg4[%c0_2, %c0_3] : memref<16x128xf32, #tpu.memory_space<vmem>>, vector<16x128xf32>
    tpu.vector_store %arg4[%c0_2, %c0_3], %53 {strides = array<i32>} : memref<16x128xf32, #tpu.memory_space<vmem>>, vector<16x128xf32>,
    return
  }
  func.func @transform_0(%arg0: i32) -> (i32, i32) {
    %c0_i32 = arith.constant 0 : i32
    %c0_i32_0 = arith.constant 0 : i32
    %c0_i32_1 = arith.constant 0 : i32
    return %c0_i32, %c0_i32_0 : i32, i32
  }
  func.func @transform_1(%arg0: i32) -> i32 {
    %c0_i32 = arith.constant 0 : i32
    %c0_i32_0 = arith.constant 0 : i32
    return %c0_i32 : i32
  }
  func.func @transform_2(%arg0: i32) -> i32 {
    %c0_i32 = arith.constant 0 : i32
    %c0_i32_0 = arith.constant 0 : i32
    return %c0_i32 : i32
  }
  func.func @transform_3(%arg0: i32) -> (i32, i32) {
    %c0_i32 = arith.constant 0 : i32
    %c0_i32_0 = arith.constant 0 : i32
    return %arg0, %c0_i32 : i32, i32
  }
}

</mosaic_0001>

<bundles_post_ra>
// kernel: tpu_custom_call.1
= control target key start
LH: loop header
LB: loop body
LE: loop exit
PB: predicated region body
PF: predicated region fallthrough
CT: control target
= control target key end

     0   :  { %9 = vsyncpa [#allocation4], 0  ;;  %s578_s0 = inlined_call_operand.hbm [shape: f32[24,256], index: 0, kind: input, shape index: {}]   ;;  %s579_s1 = inlined_call_operand.vmem [shape: f32[9], index: 1, kind: input, shape index: {}]   ;;  %s580_s2 = inlined_call_operand.<no memory space> [shape: f32[1], index: 2, kind: input, shape index: {}]   ;;  %s581_s3 = inlined_call_operand.hbm [shape: f32[16,128], index: 3, kind: output, shape index: {}]  }
   0x1   :  { %10 = vsyncpa [#allocation6], 0 }
   0x2   :  { %11 = vsyncpa [#allocation5], 0  ;;  %s402_s12 = smov [#allocation3]   ;;  %s30_s16 = sshll.u32 %s579_s1, 4  ;;  %s31_s16 = int_to_ptr.vmem [resolvable:$true] %s30_s16 }
   0x3   :  { %s17_s13 = sshll.u32 %s402_s12, 4  ;;  %s340_s19 = scalar_lea.hbm %s578_s0, 768  ;;  %s18_s13 = int_to_ptr.vmem [resolvable:$true] %s17_s13 }
   0x4   :  { %p341_p0 = scmp.ne.s32.totalorder %s578_s0, %s340_s19  ;;  %p344_p1 = scmp.lt.u32.totalorder %s340_s19, %s578_s0 }
   0x6   :  { %p346_p2 = pnand %p344_p1, %p341_p0 }
   0x8   :  { %349 = shalt.err (!%p346_p2)
}
   0x9   :  { %s350_s24 = scalar_lea.vmem %s18_s13, 768  ;;  %p355_p4 = scmp.lt.s32.totalorder %s18_s13, %s18_s13 }
   0xa   :  { %p351_p3 = scmp.ne.s32.totalorder %s18_s13, %s350_s24  ;;  %p356_p5 = scmp.lt.s32.totalorder %s350_s24, %s350_s24 }
   0xc   :  { %p357_p6 = por %p356_p5, %p355_p4 }
   0xe   :  { %p358_p7 = pnand %p357_p6, %p351_p3 }
  0x10   :  { %361 = shalt.err (!%p358_p7)
}
  0x11   :  { %s403_s1 = smov 256   ;;  %s404_s25 = smov 16  }
  0x12   :  { %23 = dma.hbm_to_vmem [thread:$0]  %s578_s0, 768, %s18_s13, [#allocation4], %s403_s1, %s403_s1, %s404_s25  }
  0x13   :  { %s362_s28 = scalar_lea.vmem %s31_s16, 16  ;;  %p367_p9 = scmp.lt.s32.totalorder %s31_s16, %s31_s16 }
  0x14   :  { %p363_p8 = scmp.ne.s32.totalorder %s31_s16, %s362_s28  ;;  %p368_p10 = scmp.lt.s32.totalorder %s362_s28, %s362_s28 }
  0x16   :  { %p369_p11 = por %p368_p10, %p367_p9 }
  0x18   :  { %p370_p12 = pnand %p369_p11, %p363_p8 }
  0x1a   :  { %373 = shalt.err (!%p370_p12)
}
  0x1b   :  { %s405_s29 = smov [#allocation7]  }
  0x1c   :  { %33 = dma.vmem_to_smem %s31_s16, 16, %s405_s29, [#allocation6]  }
  0x1d   :  { %396 = dma.done.wait [#allocation4], 768  }
  0x1e   :  { %397 = vsyncadd [#allocation4], 4294966528 }
  0x1f   :  { %398 = dma.done.wait [#allocation6], 16  }
  0x20   :  { %399 = vsyncadd [#allocation6], 4294967280 }
  0x21   :  { %42 = sfence }
  0x22   :  { %s325_s30 = sld [smem:[#allocation7 + $0x1]]  ;;  %s326_s4 = sld [smem:[#allocation7 + $0x4]]  ;;  %v446_v0 = vld [vmem:[#allocation3 + $0x10] sm:$0xff]  ;;  %v448_v1 = vld [vmem:[#allocation3] sm:$0xff]  ;;  %v450_v2 = vld [vmem:[#allocation3 + $0x18] sm:$0xff]  ;;  %vm71_vm0 = vcmask 1046528   ;;  %v56_v47 = vstv %s580_s2 }
  0x23   :  { %s327_s5 = sld [smem:[#allocation7 + $0x7]]  ;;  %v452_v3 = vld [vmem:[#allocation3 + $0x8] sm:$0xff]  ;;  %v458_v8 = vld [vmem:[#allocation3 + $0x20] sm:$0x3]  ;;  %s406_s0 = smov 127   ;;  %vm89_vm1 = vcmask 1045504  }
  0x24   :  { %v456_v7 = vld [vmem:[#allocation3 + $0x28] sm:$0x3]  ;;  %s328_s6 = sld [smem:[#allocation7 + $0x2]]  ;;  %s329_s7 = sld [smem:[#allocation7 + $0x5]]  ;;  %vm117_vm2 = vcmask 1039360   ;;  %vm218_vm3 = vcmask 1031168  }
  0x25   :  { %s482_s8 = sld [smem:[#allocation7]]  ;;  %s323_s9 = sld [smem:[#allocation7 + $0x3]] }
  0x26   :  { %s324_s10 = sld [smem:[#allocation7 + $0x6]]  ;;  %s499_s13 = sld [smem:[#allocation7 + $0x8]] }
  0x27   :  { %s407_s2 = smov 126   ;;  %s408_s14 = smov [#allocation8]  }
  0x28   :  { %v100_v4 = vstv %s325_s30  ;;  %v125_v11 = vstv %s326_s4  ;;  %s308_s15 = sshll.u32 %s408_s14, 4  ;;  %s309_s15 = int_to_ptr.vmem [resolvable:$true] %s308_s15 }
  0x29   :  { %v103_v5 = vmul.f32 %v100_v4, %v446_v0  ;;  %v101_v6 = vmul.f32 %v100_v4, %v448_v1  ;;  %v104_v9 = vmul.f32 %v100_v4, %v450_v2  ;;  %v102_v10 = vmul.f32 %v100_v4, %v452_v3  ;;  %s374_s16 = scalar_lea.vmem %s309_s15, 256  ;;  %p379_p0 = scmp.lt.s32.totalorder %s309_s15, %s309_s15 }
  0x2a   :  { %v127_v12 = vmul.f32 %v125_v11, %v452_v3  ;;  %v129_v13 = vmul.f32 %v125_v11, %v450_v2  ;;  %v126_v14 = vmul.f32 %v125_v11, %v448_v1  ;;  %v128_v15 = vmul.f32 %v125_v11, %v446_v0  ;;  %p375_p13 = scmp.ne.s32.totalorder %s309_s15, %s374_s16  ;;  %p380_p1 = scmp.lt.s32.totalorder %s374_s16, %s374_s16 }
  0x2b   :  { %113 = vrot.lane.b32.xlu1 %v103_v5, %s406_s0  ;;  %109 = vrot.lane.b32.xlu0 %v101_v6, %s406_s0  ;;  %v131_v16 = vmul.f32 %v125_v11, %v456_v7  ;;  %v130_v17 = vmul.f32 %v125_v11, %v458_v8  ;;  %v163_v18 = vstv %s327_s5  ;;  %v201_v39 = vstv %s328_s6 }
  0x2c   :  { %v141_v19 = vrot.slane %v127_v12, 1  ;;  %v142_v20 = vrot.slane %v129_v13, 1  ;;  %v138_v21 = vrot.slane %v126_v14, 1  ;;  %v139_v22 = vrot.slane %v128_v15, 1  ;;  %p381_p2 = por %p380_p1, %p379_p0 }
  0x2d   :  { %v146_v23 = vrot.slane %v131_v16, 1  ;;  %v144_v24 = vrot.slane %v130_v17, 1  ;;  %v165_v25 = vmul.f32 %v163_v18, %v452_v3  ;;  %v167_v26 = vmul.f32 %v163_v18, %v450_v2 }
  0x2e   :  { %v143_v27 = vsel %vm71_vm0, %v141_v19, %v142_v20  ;;  %v140_v28 = vsel %vm71_vm0, %v138_v21, %v139_v22  ;;  %v164_v29 = vmul.f32 %v163_v18, %v448_v1  ;;  %v166_v30 = vmul.f32 %v163_v18, %v446_v0  ;;  %p382_p3 = pnand %p381_p2, %p375_p13 }
  0x2f   :  { %115 = vrot.lane.b32.xlu1 %v104_v9, %s406_s0  ;;  %111 = vrot.lane.b32.xlu0 %v102_v10, %s406_s0  ;;  %v147_v31 = vsel %vm71_vm0, %v142_v20, %v146_v23  ;;  %v145_v32 = vsel %vm71_vm0, %v139_v22, %v144_v24  ;;  %v179_v33 = vrot.slane %v165_v25, 2  ;;  %v180_v34 = vrot.slane %v167_v26, 2 }
  0x30   :  { %v176_v35 = vrot.slane %v164_v29, 2  ;;  %v177_v36 = vrot.slane %v166_v30, 2  ;;  %v169_v37 = vmul.f32 %v163_v18, %v456_v7  ;;  %v168_v38 = vmul.f32 %v163_v18, %v458_v8 }
  0x31   :  { %v181_v40 = vsel %vm89_vm1, %v179_v33, %v180_v34  ;;  %v226_v44 = vstv %s329_s7  ;;  %v203_v45 = vmul.f32 %v201_v39, %v452_v3  ;;  %v202_v46 = vmul.f32 %v201_v39, %v448_v1 }
  0x32   :  { %v178_v41 = vsel %vm89_vm1, %v176_v35, %v177_v36  ;;  %v184_v42 = vrot.slane %v169_v37, 2  ;;  %v182_v43 = vrot.slane %v168_v38, 2  ;;  %v205_v48 = vmul.f32 %v201_v39, %v450_v2 }
  0x33   :  { %150 = vrot.lane.b32.xlu1 %v143_v27, %s406_s0  ;;  %148 = vrot.lane.b32.xlu0 %v140_v28, %s406_s0  ;;  %v204_v49 = vmul.f32 %v201_v39, %v446_v0  ;;  %v58_v50 = vstv %s482_s8  ;;  %v64_v51 = vstv %s323_s9  ;;  %v228_v54 = vmul.f32 %v226_v44, %v452_v3 }
  0x34   :  { %v185_v52 = vsel %vm89_vm1, %v180_v34, %v184_v42  ;;  %v183_v53 = vsel %vm89_vm1, %v177_v36, %v182_v43  ;;  %v67_v55 = vmul.f32 %v64_v51, %v458_v8  ;;  %v230_v56 = vmul.f32 %v226_v44, %v450_v2 }
  0x35   :  { %v82_v57 = vstv %s324_s10  ;;  %v60_v58 = vmul.f32 %v58_v50, %v446_v0  ;;  %v66_v59 = vmul.f32 %v64_v51, %v446_v0  ;;  %v227_v60 = vmul.f32 %v226_v44, %v448_v1 }
  0x36   :  { %v75_v61 = vrot.slane %v67_v55, 1  ;;  %v85_v62 = vmul.f32 %v82_v57, %v458_v8  ;;  %v84_v63 = vmul.f32 %v82_v57, %v446_v0  ;;  %v229_v4 = vmul.f32 %v226_v44, %v446_v0 }
  0x37   :  { %154 = vrot.lane.b32.xlu1 %v147_v31, %s406_s0  ;;  %152 = vrot.lane.b32.xlu0 %v145_v32, %s406_s0  ;;  %v62_v5 = vadd.f32 %v60_v58, %v56_v47  ;;  %v73_v6 = vrot.slane %v66_v59, 1  ;;  %v59_v9 = vmul.f32 %v58_v50, %v448_v1  ;;  %v65_v12 = vmul.f32 %v64_v51, %v448_v1 }
  0x38   :  { %v93_v10 = vrot.slane %v85_v62, 2  ;;  %v91_v11 = vrot.slane %v84_v63, 2  ;;  %v83_v13 = vmul.f32 %v82_v57, %v448_v1  ;;  %v232_v14 = vmul.f32 %v226_v44, %v456_v7 }
  0x39   :  { %v231_v15 = vmul.f32 %v226_v44, %v458_v8  ;;  %v76_v16 = vsel %vm71_vm0, %v73_v6, %v75_v61  ;;  %v61_v17 = vadd.f32 %v59_v9, %v56_v47  ;;  %v72_v20 = vrot.slane %v65_v12, 1 }
  0x3a   :  { %v80_v18 = vadd.f32 %v76_v16, %v62_v5  ;;  %v94_v19 = vsel %vm89_vm1, %v91_v11, %v93_v10  ;;  %v90_v21 = vrot.slane %v83_v13, 2  ;;  %v242_v22 = vrot.slane %v228_v54, 1 }
  0x3b   :  { %188 = vrot.lane.b32.xlu1 %v181_v40, %s406_s0  ;;  %186 = vrot.lane.b32.xlu0 %v178_v41, %s406_s0  ;;  %v243_v23 = vrot.slane %v230_v56, 1  ;;  %v239_v24 = vrot.slane %v227_v60, 1  ;;  %v264_v25 = vstv %s499_s13  ;;  %v240_v26 = vrot.slane %v229_v4, 1 }
  0x3c   :  { %v525_v27 = vadd.f32 %v94_v19, %v80_v18  ;;  %v74_v28 = vsel %vm71_vm0, %v72_v20, %v73_v6  ;;  %v92_v29 = vsel %vm89_vm1, %v90_v21, %v91_v11  ;;  %v247_v31 = vrot.slane %v232_v14, 1 }
  0x3d   :  { %v79_v30 = vadd.f32 %v74_v28, %v61_v17  ;;  %v245_v32 = vrot.slane %v231_v15, 1  ;;  %v266_v33 = vmul.f32 %v264_v25, %v452_v3  ;;  %v268_v34 = vmul.f32 %v264_v25, %v450_v2 }
  0x3e   :  { %v244_v36 = vsel %vm71_vm0, %v242_v22, %v243_v23  ;;  %v241_v37 = vsel %vm71_vm0, %v239_v24, %v240_v26  ;;  %v265_v38 = vmul.f32 %v264_v25, %v448_v1  ;;  %v267_v39 = vmul.f32 %v264_v25, %v446_v0 }
  0x3f   :  { %192 = vrot.lane.b32.xlu1 %v185_v52, %s406_s0  ;;  %190 = vrot.lane.b32.xlu0 %v183_v53, %s406_s0  ;;  %v97_v35 = vadd.f32 %v92_v29, %v79_v30  ;;  %v248_v40 = vsel %vm71_vm0, %v243_v23, %v247_v31  ;;  %v246_v41 = vsel %vm71_vm0, %v240_v26, %v245_v32  ;;  %v280_v3 = vrot.slane %v266_v33, 2 }
  0x40   :  { %v281_v42 = vrot.slane %v268_v34, 2  ;;  %v277_v2 = vrot.slane %v265_v38, 2  ;;  %v278_v43 = vrot.slane %v267_v39, 2  ;;  %v270_v44 = vmul.f32 %v264_v25, %v456_v7 }
  0x42   :  { %v282_v0 = vsel %vm89_vm1, %v280_v3, %v281_v42  ;;  %v279_v1 = vsel %vm89_vm1, %v277_v2, %v278_v43 }
  0x43   :  { %212 = vrot.lane.b32.xlu1 %v203_v45, %s407_s2  ;;  %210 = vrot.lane.b32.xlu0 %v202_v46, %s407_s2  ;;  %v269_v45 = vmul.f32 %v264_v25, %v458_v8  ;;  %v285_v46 = vrot.slane %v270_v44, 2 }
  0x45   :  { %v283_v47 = vrot.slane %v269_v45, 2 }
  0x47   :  { %216 = vrot.lane.b32.xlu1 %v205_v48, %s407_s2  ;;  %214 = vrot.lane.b32.xlu0 %v204_v49, %s407_s2  ;;  %v286_v48 = vsel %vm89_vm1, %v281_v42, %v285_v46  ;;  %v284_v7 = vsel %vm89_vm1, %v278_v43, %v283_v47 }
  0x4b   :  { %251 = vrot.lane.b32.xlu1 %v244_v36, %s407_s2  ;;  %249 = vrot.lane.b32.xlu0 %v241_v37, %s407_s2 }
  0x4f   :  { %255 = vrot.lane.b32.xlu1 %v248_v40, %s407_s2  ;;  %253 = vrot.lane.b32.xlu0 %v246_v41, %s407_s2 }
  0x53   :  { %289 = vrot.lane.b32.xlu1 %v282_v0, %s407_s2  ;;  %287 = vrot.lane.b32.xlu0 %v279_v1, %s407_s2 }
  0x57   :  { %293 = vrot.lane.b32.xlu1 %v286_v48, %s407_s2  ;;  %291 = vrot.lane.b32.xlu0 %v284_v7, %s407_s2 }
  0x9d   :  { %v114_v8 = vpop.permute.xlu1 %113  ;;  %v110_v49 = vpop.permute.xlu0 %109 }
  0xa1   :  { %v116_v50 = vpop.permute.xlu1 %115  ;;  %v112_v51 = vpop.permute.xlu0 %111 }
  0xa2   :  { %v118_v4 = vsel %vm117_vm2, %v110_v49, %v112_v51  ;;  %v119_v11 = vsel %vm117_vm2, %v114_v8, %v116_v50 }
  0xa3   :  { %v122_v6 = vadd.f32 %v118_v4, %v97_v35  ;;  %v123_v16 = vadd.f32 %v119_v11, %v525_v27 }
  0xa5   :  { %v151_v52 = vpop.permute.xlu1 %150  ;;  %v149_v53 = vpop.permute.xlu0 %148 }
  0xa6   :  { %v156_v5 = vsel %vm117_vm2, %v149_v53, %v151_v52 }
  0xa7   :  { %v160_v13 = vadd.f32 %v156_v5, %v122_v6 }
  0xa9   :  { %v155_v54 = vpop.permute.xlu1 %154  ;;  %v153_v55 = vpop.permute.xlu0 %152 }
  0xaa   :  { %v157_v14 = vsel %vm117_vm2, %v153_v55, %v155_v54 }
  0xab   :  { %v161_v22 = vadd.f32 %v157_v14, %v123_v16 }
  0xad   :  { %v189_v56 = vpop.permute.xlu1 %188  ;;  %v187_v57 = vpop.permute.xlu0 %186 }
  0xae   :  { %v194_v12 = vsel %vm117_vm2, %v187_v57, %v189_v56 }
  0xaf   :  { %v198_v17 = vadd.f32 %v194_v12, %v160_v13 }
  0xb1   :  { %v193_v58 = vpop.permute.xlu1 %192  ;;  %v191_v59 = vpop.permute.xlu0 %190 }
  0xb2   :  { %v195_v20 = vsel %vm117_vm2, %v191_v59, %v193_v58 }
  0xb3   :  { %v199_v25 = vadd.f32 %v195_v20, %v161_v22 }
  0xb5   :  { %v213_v60 = vpop.permute.xlu1 %212  ;;  %v211_v61 = vpop.permute.xlu0 %210 }
  0xb6   :  { %v219_v15 = vsel %vm218_vm3, %v211_v61, %v213_v60 }
  0xb7   :  { %v223_v23 = vadd.f32 %v219_v15, %v198_v17 }
  0xb9   :  { %v217_v62 = vpop.permute.xlu1 %216  ;;  %v215_v63 = vpop.permute.xlu0 %214 }
  0xba   :  { %v220_v24 = vsel %vm218_vm3, %v215_v63, %v217_v62 }
  0xbb   :  { %v224_v27 = vadd.f32 %v220_v24, %v199_v25 }
  0xbd   :  { %v252_v9 = vpop.permute.xlu1 %251  ;;  %v250_v10 = vpop.permute.xlu0 %249 }
  0xbe   :  { %v257_v21 = vsel %vm218_vm3, %v250_v10, %v252_v9 }
  0xbf   :  { %v261_v26 = vadd.f32 %v257_v21, %v223_v23 }
  0xc1   :  { %v256_v18 = vpop.permute.xlu1 %255  ;;  %v254_v19 = vpop.permute.xlu0 %253 }
  0xc2   :  { %v258_v30 = vsel %vm218_vm3, %v254_v19, %v256_v18 }
  0xc3   :  { %v262_v33 = vadd.f32 %v258_v30, %v224_v27 }
  0xc5   :  { %v290_v28 = vpop.permute.xlu1 %289  ;;  %v288_v29 = vpop.permute.xlu0 %287 }
  0xc6   :  { %v295_v31 = vsel %vm218_vm3, %v288_v29, %v290_v28 }
  0xc7   :  { %v299_v32 = vadd.f32 %v295_v31, %v261_v26 }
  0xc9   :  { %301 = vst [vmem:[#allocation8] sm:$0xff] %v299_v32  ;;  %v294_v34 = vpop.permute.xlu1 %293  ;;  %v292_v35 = vpop.permute.xlu0 %291 }
  0xca   :  { %v296_v36 = vsel %vm218_vm3, %v292_v35, %v294_v34 }
  0xcb   :  { %v300_v37 = vadd.f32 %v296_v36, %v262_v33 }
  0xcd   :  { %302 = vst [vmem:[#allocation8 + $0x8] sm:$0xff] %v300_v37 }
  0xce   :  { %385 = shalt.err (!%p382_p3)
}
  0xcf   :  { %s386_s19 = scalar_lea.hbm %s581_s3, 256 }
  0xd0   :  { %p387_p4 = scmp.ne.s32.totalorder %s581_s3, %s386_s19  ;;  %p390_p5 = scmp.lt.u32.totalorder %s386_s19, %s581_s3 }
  0xd2   :  { %p392_p6 = pnand %p390_p5, %p387_p4 }
  0xd4   :  { %395 = shalt.err (!%p392_p6)
}
  0xd5   :  { %s409_s24 = smov 128   ;;  %s410_s1 = smov 8  }
  0xd6   :  { %314 = dma.vmem_to_hbm [thread:$0]  %s309_s15, 256, %s581_s3, [#allocation5], %s409_s24, %s409_s24, %s410_s1  }
  0xd7   :  { %400 = dma.done.wait [#allocation5], 256  }
  0xd8   :  { %401 = vsyncadd [#allocation5], 4294967040 }
  0xd9   :  { %318 = vsyncpa [#allocation4], 1 }
  0xda   :  { %319 = vsyncpa [#allocation5], 1 }
  0xdb   :  { %320 = vsyncpa [#allocation6], 1 }

</bundles_post_ra>
